<compile_context>
chip_gen: v6e
topology: v6e:2x2x1
jax: 0.10.0
libtpu: 0.0.40
codegen_flags: <defaults>
</compile_context>

<pallas_src>
import functools

import jax
import jax.numpy as jnp
from jax.experimental import pallas as pl
from jax.experimental.pallas import tpu as pltpu


def _round_up(a: int, m: int) -> int:
    return (a + m - 1) // m * m


def _patch_proj_kernel(p_ref, w_ref, b_ref, o_ref):
    # p_ref: (TILE_M, K_pad) patches   (compute dtype, e.g. bf16)
    # w_ref: (K_pad, E_pad)  weight    (compute dtype, resident across grid)
    # b_ref: (1, E_pad)      bias      (f32)
    # o_ref: (TILE_M, E_pad) output    (caller dtype)
    acc = jnp.dot(p_ref[...], w_ref[...], preferred_element_type=jnp.float32)
    o_ref[...] = (acc + b_ref[...]).astype(o_ref.dtype)


@functools.partial(jax.jit, static_argnames=("patch_size", "compute_dtype", "tile_m"))
def patch_embed_forward(x, weight, bias, patch_size,
                        compute_dtype=jnp.bfloat16, tile_m=1024):
    """x: (B, C, H, W) NCHW (like PyTorch).
    weight: (E, C, ph, pw) (PyTorch Conv2d layout), bias: (E,).
    Returns (B, num_patches, E), matching PatchEmbed.forward (flatten=True,
    norm_layer=None -> Identity)."""
    B, C, H, W = x.shape
    ph, pw = patch_size
    E = weight.shape[0]
    assert H % ph == 0 and W % pw == 0
    gh, gw = H // ph, W // pw
    n_patches = gh * gw
    K = C * ph * pw
    M = B * n_patches
    out_dtype = x.dtype

    # --- glue: extract patches; inner order (C, ph, pw) matches conv weight.
    # Cast to the compute dtype *first* so the transpose pass moves fewer bytes.
    xc = x.astype(compute_dtype)
    xp = xc.reshape(B, C, gh, ph, gw, pw)
    xp = jnp.transpose(xp, (0, 2, 4, 1, 3, 5))          # (B, gh, gw, C, ph, pw)
    patches = xp.reshape(M, K)                          # (M, K)

    w_mat = weight.reshape(E, K).T.astype(compute_dtype)   # (K, E)
    b_mat = bias.astype(jnp.float32).reshape(1, E)          # (1, E), f32

    # --- lane-dense padding: K and E up to multiples of 128, M up to TILE_M.
    K_pad = _round_up(K, 128)
    E_pad = _round_up(E, 128)
    tm = _round_up(max(8, min(int(tile_m), _round_up(M, 8))), 8)
    M_pad = _round_up(M, tm)

    if (M_pad, K_pad) != (M, K):
        patches = jnp.pad(patches, ((0, M_pad - M), (0, K_pad - K)))
    if (K_pad, E_pad) != (K, E):
        w_mat = jnp.pad(w_mat, ((0, K_pad - K), (0, E_pad - E)))
    if E_pad != E:
        b_mat = jnp.pad(b_mat, ((0, 0), (0, E_pad - E)))

    grid = (M_pad // tm,)

    # --- explicit VMEM budget: double-buffered in/out tiles + resident weight.
    in_b = jnp.dtype(compute_dtype).itemsize
    out_b = jnp.dtype(out_dtype).itemsize
    work = (2 * tm * K_pad * in_b            # patch tiles (double-buffered)
            + K_pad * E_pad * in_b           # resident weight
            + 2 * tm * E_pad * out_b         # output tiles (double-buffered)
            + tm * E_pad * 4                 # f32 accumulator headroom
            + 2 * E_pad * 4)                 # bias
    vmem_limit = int(min(max(2 * work, 16 * 1024 * 1024), 64 * 1024 * 1024))

    out2d = pl.pallas_call(
        _patch_proj_kernel,
        out_shape=jax.ShapeDtypeStruct((M_pad, E_pad), out_dtype),
        grid=grid,
        in_specs=[
            pl.BlockSpec((tm, K_pad), lambda i: (i, 0)),      # patch tile
            pl.BlockSpec((K_pad, E_pad), lambda i: (0, 0)),   # weight (resident)
            pl.BlockSpec((1, E_pad), lambda i: (0, 0)),       # bias (resident)
        ],
        out_specs=pl.BlockSpec((tm, E_pad), lambda i: (i, 0)),
        compiler_params=pltpu.CompilerParams(
            dimension_semantics=("parallel",),
            vmem_limit_bytes=vmem_limit,
        ),
    )(patches, w_mat, b_mat)

    # --- glue: strip padding, (M, E) -> (B, N, E) == flatten(2).transpose(1,2)
    return out2d[:M, :E].reshape(B, n_patches, E)


def reference_forward(x, weight, bias, patch_size, compute_dtype=jnp.float32):
    """Pure-JAX reference of the PyTorch module (Conv2d stride=kernel)."""
    out = jax.lax.conv_general_dilated(
        x.astype(compute_dtype), weight.astype(compute_dtype),
        window_strides=patch_size,
        padding="VALID",
        dimension_numbers=("NCHW", "OIHW", "NCHW"),
        preferred_element_type=jnp.float32,
    ) + bias[None, :, None, None].astype(jnp.float32)
    out = out.astype(x.dtype)
    B, E, gh, gw = out.shape
    return jnp.transpose(out.reshape(B, E, gh * gw), (0, 2, 1))


if __name__ == "__main__":
    # Small, module-consistent shapes: img_size=16, patch_size=4,
    # in_chans=4, embed_dim=32, batch=2  ->  x: (2, 4, 16, 16)
    B, C, H, W = 2, 4, 16, 16
    ph = pw = 4
    E = 32

    key = jax.random.PRNGKey(0)
    kx, kw, kb = jax.random.split(key, 3)
    x = jax.random.normal(kx, (B, C, H, W), dtype=jnp.float32)
    # Deterministic synthetic parameters (shapes from nn.Conv2d(C, E, 4, 4)).
    weight = 0.02 * jax.random.truncated_normal(
        kw, -2.0, 2.0, (E, C, ph, pw), dtype=jnp.float32)
    bias = 0.01 * jax.random.normal(kb, (E,), dtype=jnp.float32)

    n_patches = (H // ph) * (W // pw)

    # 1) f32 compute path: tight check against the f32 conv reference
    #    (validates patch ordering / weight layout / bias).
    out_f32 = jax.block_until_ready(
        patch_embed_forward(x, weight, bias, (ph, pw),
                            compute_dtype=jnp.float32))
    ref_f32 = jax.block_until_ready(
        reference_forward(x, weight, bias, (ph, pw),
                          compute_dtype=jnp.float32))
    assert out_f32.shape == (B, n_patches, E)
    assert jnp.allclose(out_f32, ref_f32, atol=1e-4, rtol=1e-4)

    # 2) default bf16 compute path (the fast path): check against a reference
    #    built from the same bf16-cast operands with f32 accumulation.
    out_bf16 = jax.block_until_ready(
        patch_embed_forward(x, weight, bias, (ph, pw)))
    ref_bf16 = jax.block_until_ready(
        reference_forward(x, weight, bias, (ph, pw),
                          compute_dtype=jnp.bfloat16))
    assert out_bf16.shape == (B, n_patches, E)
    assert jnp.allclose(out_bf16, ref_bf16, atol=2e-2, rtol=2e-2)

    print("KERNEL_OK")
</pallas_src>

<mosaic_0001>
module attributes {stable_mosaic.version = 11 : i64} {
  func.func @_patch_proj_kernel(%arg0: i32, %arg1: memref<32x128xf32, #tpu.memory_space<vmem>>, %arg2: memref<128x128xf32, #tpu.memory_space<vmem>>, %arg3: memref<1x128xf32, #tpu.memory_space<vmem>>, %arg4: memref<32x128xf32, #tpu.memory_space<vmem>>) attributes {dimension_semantics = [#tpu.dimension_semantics<parallel>], iteration_bounds = array<i64: 1>, scalar_prefetch = 0 : i64, scratch_operands = 0 : i64, tpu.core_type = #tpu.core_type<tc>, window_params = [{transform_indices = @transform_0, window_bounds = array<i64: 32, 128>}, {pipeline_mode = #tpu.pipeline_mode<synchronous>, transform_indices = @transform_1, window_bounds = array<i64: 128, 128>}, {pipeline_mode = #tpu.pipeline_mode<synchronous>, transform_indices = @transform_2, window_bounds = array<i64: 1, 128>}, {transform_indices = @transform_3, window_bounds = array<i64: 32, 128>}]} {
    %c0 = arith.constant 0 : index
    %c0_0 = arith.constant 0 : index
    %0 = vector.load %arg1[%c0, %c0_0] : memref<32x128xf32, #tpu.memory_space<vmem>>, vector<32x128xf32>
    %c0_1 = arith.constant 0 : index
    %c0_2 = arith.constant 0 : index
    %1 = vector.load %arg2[%c0_1, %c0_2] : memref<128x128xf32, #tpu.memory_space<vmem>>, vector<128x128xf32>
    %cst = arith.constant dense<0.000000e+00> : vector<32x128xf32>
    %2 = tpu.matmul %0, %1, %cst {dimension_numbers = #tpu.dot_dimension_numbers<[1], [0], [0], [1], [0, 0, 1, 1], [], []>} : vector<32x128xf32>, vector<128x128xf32>, vector<32x128xf32> -> vector<32x128xf32>
    %c0_3 = arith.constant 0 : index
    %c0_4 = arith.constant 0 : index
    %3 = vector.load %arg3[%c0_3, %c0_4] : memref<1x128xf32, #tpu.memory_space<vmem>>, vector<1x128xf32>
    %4 = vector.broadcast %3 : vector<1x128xf32> to vector<32x128xf32>
    %5 = arith.addf %2, %4 : vector<32x128xf32>
    %c0_5 = arith.constant 0 : index
    %c0_6 = arith.constant 0 : index
    %6 = vector.load %arg4[%c0_5, %c0_6] : memref<32x128xf32, #tpu.memory_space<vmem>>, vector<32x128xf32>
    tpu.vector_store %arg4[%c0_5, %c0_6], %5 {strides = array<i32>} : memref<32x128xf32, #tpu.memory_space<vmem>>, vector<32x128xf32>,
    return
  }
  func.func @transform_0(%arg0: i32) -> (i32, i32) {
    %c0_i32 = arith.constant 0 : i32
    %c0_i32_0 = arith.constant 0 : i32
    return %arg0, %c0_i32 : i32, i32
  }
  func.func @transform_1(%arg0: i32) -> (i32, i32) {
    %c0_i32 = arith.constant 0 : i32
    %c0_i32_0 = arith.constant 0 : i32
    %c0_i32_1 = arith.constant 0 : i32
    return %c0_i32, %c0_i32_0 : i32, i32
  }
  func.func @transform_2(%arg0: i32) -> (i32, i32) {
    %c0_i32 = arith.constant 0 : i32
    %c0_i32_0 = arith.constant 0 : i32
    %c0_i32_1 = arith.constant 0 : i32
    return %c0_i32, %c0_i32_0 : i32, i32
  }
  func.func @transform_3(%arg0: i32) -> (i32, i32) {
    %c0_i32 = arith.constant 0 : i32
    %c0_i32_0 = arith.constant 0 : i32
    return %arg0, %c0_i32 : i32, i32
  }
}

</mosaic_0001>

<bundles_post_ra>
// kernel: patch_embed_forward.1
= control target key start
LH: loop header
LB: loop body
LE: loop exit
PB: predicated region body
PF: predicated region fallthrough
CT: control target
= control target key end

     0   :  { %s352_s0 = inlined_call_operand.vmem [shape: f32[32,128], index: 0, kind: input, shape index: {}]   ;;  %s353_s1 = inlined_call_operand.vmem [shape: f32[128,128], index: 1, kind: input, shape index: {}]   ;;  %s354_s2 = inlined_call_operand.vmem [shape: f32[1,128], index: 2, kind: input, shape index: {}]   ;;  %s355_s3 = inlined_call_operand.hbm [shape: f32[32,128], index: 3, kind: output, shape index: {}]  }
   0x1   :  { %v34_v0 = vld [vmem:[%s353_s1 + $0x78] sm:$0xff]  ;;  %v33_v1 = vld [vmem:[%s353_s1 + $0x70] sm:$0xff]  ;;  %v32_v2 = vld [vmem:[%s353_s1 + $0x68] sm:$0xff] }
   0x2   :  { %168 = vmatprep.subr.mxu0 %v34_v0  ;;  %206 = vmatprep.subr.mxu1 %v34_v0  ;;  %v31_v3 = vld [vmem:[%s353_s1 + $0x60] sm:$0xff]  ;;  %v30_v4 = vld [vmem:[%s353_s1 + $0x58] sm:$0xff] }
   0x3   :  { %169 = vmatpush3.msra.mxu0 %v34_v0  ;;  %222 = vmatpush3.msra.mxu1 %v34_v0 }
   0x4   :  { %170 = vmatprep.subr.mxu0 %v33_v1  ;;  %207 = vmatprep.subr.mxu1 %v33_v1 }
   0x5   :  { %171 = vmatpush3.msra.mxu0 %v33_v1  ;;  %223 = vmatpush3.msra.mxu1 %v33_v1 }
   0x6   :  { %172 = vmatprep.subr.mxu0 %v32_v2  ;;  %208 = vmatprep.subr.mxu1 %v32_v2 }
   0x7   :  { %173 = vmatpush3.msra.mxu0 %v32_v2  ;;  %224 = vmatpush3.msra.mxu1 %v32_v2 }
   0x8   :  { %8 = vsyncpa [#allocation3], 0  ;;  %174 = vmatprep.subr.mxu0 %v31_v3  ;;  %209 = vmatprep.subr.mxu1 %v31_v3  ;;  %v29_v5 = vld [vmem:[%s353_s1 + $0x50] sm:$0xff]  ;;  %v28_v6 = vld [vmem:[%s353_s1 + $0x48] sm:$0xff]  ;;  %s263_s26 = smov [#allocation2]  }
   0x9   :  { %175 = vmatpush3.msra.mxu0 %v31_v3  ;;  %225 = vmatpush3.msra.mxu1 %v31_v3  ;;  %v27_v7 = vld [vmem:[%s353_s1 + $0x40] sm:$0xff]  ;;  %v26_v8 = vld [vmem:[%s353_s1 + $0x38] sm:$0xff]  ;;  %v25_v9 = vld [vmem:[%s353_s1 + $0x30] sm:$0xff]  ;;  %s136_s27 = sshll.u32 %s263_s26, 4  ;;  %s137_s27 = int_to_ptr.vmem [resolvable:$true] %s136_s27 }
   0xa   :  { %176 = vmatprep.subr.mxu0 %v30_v4  ;;  %210 = vmatprep.subr.mxu1 %v30_v4  ;;  %v24_v10 = vld [vmem:[%s353_s1 + $0x28] sm:$0xff]  ;;  %v23_v11 = vld [vmem:[%s353_s1 + $0x20] sm:$0xff]  ;;  %v22_v12 = vld [vmem:[%s353_s1 + $0x18] sm:$0xff]  ;;  %p246_p1 = scmp.lt.s32.totalorder %s137_s27, %s137_s27 }
   0xb   :  { %177 = vmatpush3.msra.mxu0 %v30_v4  ;;  %226 = vmatpush3.msra.mxu1 %v30_v4  ;;  %v21_v13 = vld [vmem:[%s353_s1 + $0x10] sm:$0xff]  ;;  %v20_v14 = vld [vmem:[%s353_s1 + $0x8] sm:$0xff]  ;;  %v19_v15 = vld [vmem:[%s353_s1] sm:$0xff] }
   0xc   :  { %178 = vmatprep.subr.mxu0 %v29_v5  ;;  %211 = vmatprep.subr.mxu1 %v29_v5  ;;  %v15_v16 = vld [vmem:[%s352_s0] sm:$0xff]  ;;  %v17_v17 = vld [vmem:[%s352_s0 + $0x10] sm:$0xff]  ;;  %v16_v18 = vld [vmem:[%s352_s0 + $0x8] sm:$0xff] }
   0xd   :  { %179 = vmatpush3.msra.mxu0 %v29_v5  ;;  %227 = vmatpush3.msra.mxu1 %v29_v5  ;;  %v18_v19 = vld [vmem:[%s352_s0 + $0x18] sm:$0xff]  ;;  %v147_v20 = vld [vmem:[%s354_s2] ss:$0 sm:$0xff]  ;;  %s241_s0 = scalar_lea.vmem %s137_s27, 512 }
   0xe   :  { %180 = vmatprep.subr.mxu0 %v28_v6  ;;  %212 = vmatprep.subr.mxu1 %v28_v6  ;;  %p242_p0 = scmp.ne.s32.totalorder %s137_s27, %s241_s0  ;;  %p247_p2 = scmp.lt.s32.totalorder %s241_s0, %s241_s0 }
   0xf   :  { %181 = vmatpush3.msra.mxu0 %v28_v6  ;;  %228 = vmatpush3.msra.mxu1 %v28_v6 }
  0x10   :  { %182 = vmatprep.subr.mxu0 %v27_v7  ;;  %213 = vmatprep.subr.mxu1 %v27_v7  ;;  %p248_p3 = por %p247_p2, %p246_p1 }
  0x11   :  { %183 = vmatpush3.msra.mxu0 %v27_v7  ;;  %229 = vmatpush3.msra.mxu1 %v27_v7 }
  0x12   :  { %184 = vmatprep.subr.mxu0 %v26_v8  ;;  %214 = vmatprep.subr.mxu1 %v26_v8  ;;  %p249_p4 = pnand %p248_p3, %p242_p0 }
  0x13   :  { %185 = vmatpush3.msra.mxu0 %v26_v8  ;;  %230 = vmatpush3.msra.mxu1 %v26_v8 }
  0x14   :  { %186 = vmatprep.subr.mxu0 %v25_v9  ;;  %215 = vmatprep.subr.mxu1 %v25_v9 }
  0x15   :  { %187 = vmatpush3.msra.mxu0 %v25_v9  ;;  %231 = vmatpush3.msra.mxu1 %v25_v9 }
  0x16   :  { %188 = vmatprep.subr.mxu0 %v24_v10  ;;  %216 = vmatprep.subr.mxu1 %v24_v10 }
  0x17   :  { %189 = vmatpush3.msra.mxu0 %v24_v10  ;;  %232 = vmatpush3.msra.mxu1 %v24_v10 }
  0x18   :  { %190 = vmatprep.subr.mxu0 %v23_v11  ;;  %217 = vmatprep.subr.mxu1 %v23_v11 }
  0x19   :  { %191 = vmatpush3.msra.mxu0 %v23_v11  ;;  %233 = vmatpush3.msra.mxu1 %v23_v11 }
  0x1a   :  { %192 = vmatprep.subr.mxu0 %v22_v12  ;;  %218 = vmatprep.subr.mxu1 %v22_v12 }
  0x1b   :  { %193 = vmatpush3.msra.mxu0 %v22_v12  ;;  %234 = vmatpush3.msra.mxu1 %v22_v12 }
  0x1c   :  { %194 = vmatprep.subr.mxu0 %v21_v13  ;;  %219 = vmatprep.subr.mxu1 %v21_v13 }
  0x1d   :  { %195 = vmatpush3.msra.mxu0 %v21_v13  ;;  %235 = vmatpush3.msra.mxu1 %v21_v13 }
  0x1e   :  { %196 = vmatprep.subr.mxu0 %v20_v14  ;;  %220 = vmatprep.subr.mxu1 %v20_v14 }
  0x1f   :  { %197 = vmatpush3.msra.mxu0 %v20_v14  ;;  %236 = vmatpush3.msra.mxu1 %v20_v14 }
  0x20   :  { %198 = vmatprep.subr.mxu0 %v19_v15  ;;  %221 = vmatprep.subr.mxu1 %v19_v15 }
  0x21   :  { %199 = vmatpush3.msra.mxu0 %v19_v15  ;;  %237 = vmatpush3.msra.mxu1 %v19_v15 }
  0x22   :  { %200 = vmatprep.mubr.f32.mxu0 %v15_v16  ;;  %203 = vmatprep.mubr.f32.mxu1 %v17_v17 }
  0x23   :  { %201 = vmatmul.mubr.f32.vlgmr.msra.gmra.mxu0 %v16_v18  ;;  %204 = vmatmul.mubr.f32.vlgmr.msra.gmra.mxu1 %v18_v19 }
  0xe3   :  { %v202_v21 = vpop.f32.mrf.mxu0  ;;  %v205_v22 = vpop.f32.mrf.mxu1 }
  0xe4   :  { %v114_v23 = vadd.f32 %v202_v21, %v147_v20  ;;  %v124_v24 = vadd.f32 %v205_v22, %v147_v20 }
  0xe5   :  { %v108_v25 = vpop.f32.mrf.mxu0  ;;  %v118_v26 = vpop.f32.mrf.mxu1 }
  0xe6   :  { %128 = vst [vmem:[#allocation2 + $0x8] sm:$0xff] %v114_v23  ;;  %130 = vst [vmem:[#allocation2 + $0x18] sm:$0xff] %v124_v24  ;;  %v109_v27 = vadd.f32 %v147_v20, %v108_v25  ;;  %v119_v28 = vadd.f32 %v147_v20, %v118_v26 }
  0xe8   :  { %127 = vst [vmem:[#allocation2] sm:$0xff] %v109_v27  ;;  %129 = vst [vmem:[#allocation2 + $0x10] sm:$0xff] %v119_v28 }
  0xe9   :  { %252 = shalt.err (!%p249_p4)
}
  0xea   :  { %s264_s2 = smov 128   ;;  %s265_s28 = smov 8  }
  0xeb   :  { %142 = dma.vmem_to_hbm [thread:$0]  %s137_s27, 512, %s355_s3, [#allocation3], %s264_s2, %s264_s2, %s265_s28  }
  0xec   :  { %261 = dma.done.wait [#allocation3], 512  }
  0xed   :  { %262 = vsyncadd [#allocation3], 4294966784 }
  0xee   :  { %146 = vsyncpa [#allocation3], 1 }

</bundles_post_ra>
